<compile_context>
chip_gen: v7x
topology: tpu7x:2x2x1
jax: 0.10.0
libtpu: 0.0.40
codegen_flags: <defaults>
</compile_context>

<pallas_src>
import jax
import jax.numpy as jnp
from jax.experimental import pallas as pl
from jax.experimental.pallas import tpu as pltpu


_LANE = 128
_SUBLANE = 8
_VMEM_BUDGET = 36 * 1024 * 1024   # resident-footprint budget (safe on v7x 64 MiB/TC)
_VMEM_LIMIT = 48 * 1024 * 1024    # scoped VMEM limit handed to Mosaic


def _round_up(x, m):
    return (x + m - 1) // m * m


def _ffn_residual_kernel(sid_ref, x_ref, w1_ref, w2_ref, o_ref):
    """o = x + relu(x @ w1) @ w2 ; bf16 MXU matmuls, f32 accumulation + residual."""
    del sid_ref                                       # only used by the index_maps
    x = x_ref[...]                                    # (tm, Dp), input dtype (f32)
    xc = x.astype(w1_ref.dtype)                       # cast for the bf16-native MXU
    h = jnp.dot(xc, w1_ref[...], preferred_element_type=jnp.float32)
    h = jnp.maximum(h, 0.0).astype(w2_ref.dtype)      # ReLU, back to bf16 for MXU #2
    y = jnp.dot(h, w2_ref[...], preferred_element_type=jnp.float32)
    o_ref[...] = (x.astype(jnp.float32) + y).astype(o_ref.dtype)


def _footprint_bytes(tm, Dp, Hp, x_bytes, w_bytes):
    tiles = 2 * tm * Dp * x_bytes * 2          # x-in + out tiles, double-buffered
    weights = 2 * 2 * Dp * Hp * w_bytes        # w1 + w2 slabs, double-buffered
    temps = 4 * tm * (Hp + 2 * Dp)             # f32 temporaries (h, y, residual)
    return tiles + weights + temps


def _choose_tm(rows_min, rows_max, Dp, Hp, x_bytes, w_bytes, tm_target=512):
    """Row tile: big enough for MXU utilisation, small enough to not over-pad the
    shorter stream, capped by the resident-VMEM budget.  Always a multiple of 8."""
    tm = min(tm_target,
             max(128, _round_up(max(rows_min, _SUBLANE), _SUBLANE)),
             _round_up(max(rows_max, _SUBLANE), _SUBLANE))
    tm = _round_up(tm, _SUBLANE)
    while tm > _SUBLANE and _footprint_bytes(tm, Dp, Hp, x_bytes, w_bytes) > _VMEM_BUDGET:
        tm = _round_up(max(tm // 2, _SUBLANE), _SUBLANE)
    return tm


def _fused_dual_ffn(stream_ids, x_cat, w1t, w2t, *, tm):
    """stream_ids: (n_blocks,) i32; x_cat: (R, Dp); w1t: (2, Dp, Hp); w2t: (2, Hp, Dp)."""
    R, Dp = x_cat.shape
    Hp = w1t.shape[2]
    assert R % tm == 0 and Dp % _LANE == 0 and Hp % _LANE == 0
    n_blocks = R // tm

    return pl.pallas_call(
        _ffn_residual_kernel,
        out_shape=jax.ShapeDtypeStruct((R, Dp), x_cat.dtype),
        grid_spec=pltpu.PrefetchScalarGridSpec(
            num_scalar_prefetch=1,                   # stream-id table -> SMEM
            grid=(n_blocks,),
            in_specs=[
                pl.BlockSpec((tm, Dp), lambda i, sid: (i, 0)),
                # data-dependent weight selection: all img blocks come first, then
                # all text blocks, so the weight slab is re-DMA'd only once.
                pl.BlockSpec((None, Dp, Hp), lambda i, sid: (sid[i], 0, 0)),
                pl.BlockSpec((None, Hp, Dp), lambda i, sid: (sid[i], 0, 0)),
            ],
            out_specs=pl.BlockSpec((tm, Dp), lambda i, sid: (i, 0)),
        ),
        compiler_params=pltpu.CompilerParams(
            dimension_semantics=("parallel",),
            vmem_limit_bytes=_VMEM_LIMIT),
    )(stream_ids, x_cat, w1t, w2t)


def prepare_fcbd_params(params, compute_dtype=jnp.bfloat16):
    """One-time prep (out of the hot path): transpose, lane-pad, cast, stack."""
    def prep(w1, w2):
        H, D = w1.shape                      # Linear(vis_dim, vis_dim//4) -> (H, D)
        Dp = _round_up(D, _LANE)
        Hp = _round_up(H, _LANE)
        w1t = jnp.zeros((Dp, Hp), compute_dtype).at[:D, :H].set(
            w1.T.astype(compute_dtype))
        w2t = jnp.zeros((Hp, Dp), compute_dtype).at[:H, :D].set(
            w2.T.astype(compute_dtype))
        return w1t, w2t

    iw1, iw2 = prep(params["img_w1"], params["img_w2"])
    tw1, tw2 = prep(params["text_w1"], params["text_w2"])
    return {"w1t": jnp.stack([iw1, tw1]),    # (2, Dp, Hp)
            "w2t": jnp.stack([iw2, tw2])}    # (2, Hp, Dp)


def fcbd_forward(img_feature, text_feature, prepped, *, tm_target=512):
    """FCBD.forward: (img + FFN1(img), text + FFN2(text)) via one fused kernel."""
    w1t, w2t = prepped["w1t"], prepped["w2t"]
    Dp, Hp = w1t.shape[1], w1t.shape[2]
    D = img_feature.shape[-1]
    assert text_feature.shape[-1] == D

    img2d = img_feature.reshape(-1, D)
    txt2d = text_feature.reshape(-1, D)
    Ri, Rt = img2d.shape[0], txt2d.shape[0]

    x_bytes = jnp.dtype(img_feature.dtype).itemsize
    w_bytes = jnp.dtype(w1t.dtype).itemsize
    assert 2 * 2 * Dp * Hp * w_bytes <= _VMEM_BUDGET, (
        "weight slabs do not fit resident in VMEM; K-tiling needed")
    tm = _choose_tm(min(Ri, Rt), max(Ri, Rt), Dp, Hp, x_bytes, w_bytes, tm_target)

    # each stream is padded only to its own multiple of tm (no cross-stream padding)
    Ri_pad = _round_up(max(Ri, 1), tm)
    Rt_pad = _round_up(max(Rt, 1), tm)

    def pad(x2d, r_pad):
        # zero rows/lanes are exact no-ops for relu(x@W1)@W2 + x and sliced away
        return jnp.pad(x2d, ((0, r_pad - x2d.shape[0]), (0, Dp - D)))

    x_cat = jnp.concatenate([pad(img2d, Ri_pad), pad(txt2d, Rt_pad)], axis=0)
    n_img, n_txt = Ri_pad // tm, Rt_pad // tm
    stream_ids = jnp.concatenate([jnp.zeros((n_img,), jnp.int32),
                                  jnp.ones((n_txt,), jnp.int32)])

    out = _fused_dual_ffn(stream_ids, x_cat, w1t, w2t, tm=tm)   # (Ri_pad+Rt_pad, Dp)

    img_out = out[:Ri, :D].reshape(img_feature.shape)
    txt_out = out[Ri_pad:Ri_pad + Rt, :D].reshape(text_feature.shape)
    return img_out, txt_out


def init_params(key, vis_dim):
    """Deterministic init matching PyTorch Linear weight shapes (no biases)."""
    hid = vis_dim // 4
    k1, k2, k3, k4 = jax.random.split(key, 4)

    def u(k, shape, fan_in):
        bound = 1.0 / jnp.sqrt(fan_in)
        return jax.random.uniform(k, shape, jnp.float32, -bound, bound)

    return {
        "img_w1": u(k1, (hid, vis_dim), vis_dim),    # Linear(vis_dim, vis_dim//4)
        "img_w2": u(k2, (vis_dim, hid), hid),        # Linear(vis_dim//4, vis_dim)
        "text_w1": u(k3, (hid, vis_dim), vis_dim),
        "text_w2": u(k4, (vis_dim, hid), hid),
    }


if __name__ == "__main__":
    key = jax.random.PRNGKey(0)
    vis_dim = 256          # H = 64 -> exercises the hidden-dim lane padding path
    batch = 2
    img_seq, text_seq = 8, 6   # different row counts -> independent per-stream padding

    kp, ki, kt = jax.random.split(key, 3)
    params = init_params(kp, vis_dim)
    img_feature = jax.random.normal(ki, (batch, img_seq, vis_dim), jnp.float32)
    text_feature = jax.random.normal(kt, (batch, text_seq, vis_dim), jnp.float32)

    prepped = prepare_fcbd_params(params)             # one-time weight prep
    fwd = jax.jit(fcbd_forward)
    img_out, text_out = fwd(img_feature, text_feature, prepped)
    jax.block_until_ready((img_out, text_out))

    # pure-JAX f32 reference check (bf16 matmuls -> loosened tolerance)
    def ref(x, w1, w2):
        h = jnp.maximum(x @ w1.T, 0.0)
        return x + h @ w2.T

    ref_img = ref(img_feature, params["img_w1"], params["img_w2"])
    ref_text = ref(text_feature, params["text_w1"], params["text_w2"])
    assert img_out.shape == img_feature.shape and text_out.shape == text_feature.shape
    assert jnp.allclose(img_out, ref_img, atol=5e-2, rtol=5e-2)
    assert jnp.allclose(text_out, ref_text, atol=5e-2, rtol=5e-2)

    print("KERNEL_OK")
</pallas_src>

<mosaic_0001>
module attributes {stable_mosaic.version = 11 : i64} {
  func.func @_ffn_residual_kernel(%arg0: i32, %arg1: memref<2xi32, #tpu.memory_space<smem>>, %arg2: memref<16x256xf32, #tpu.memory_space<vmem>>, %arg3: memref<1x256x128xbf16, #tpu.memory_space<vmem>>, %arg4: memref<1x128x256xbf16, #tpu.memory_space<vmem>>, %arg5: memref<16x256xf32, #tpu.memory_space<vmem>>) attributes {dimension_semantics = [#tpu.dimension_semantics<parallel>], iteration_bounds = array<i64: 2>, scalar_prefetch = 1 : i64, scratch_operands = 0 : i64, tpu.core_type = #tpu.core_type<tc>, window_params = [{transform_indices = @transform_0, window_bounds = array<i64: 16, 256>}, {transform_indices = @transform_1, window_bounds = array<i64: 1, 256, 128>}, {transform_indices = @transform_2, window_bounds = array<i64: 1, 128, 256>}, {transform_indices = @transform_3, window_bounds = array<i64: 16, 256>}]} {
    %c0 = arith.constant 0 : index
    %c0_0 = arith.constant 0 : index
    %0 = vector.load %arg2[%c0, %c0_0] : memref<16x256xf32, #tpu.memory_space<vmem>>, vector<16x256xf32>
    %1 = arith.truncf %0 : vector<16x256xf32> to vector<16x256xbf16>
    %c0_1 = arith.constant 0 : index
    %c0_2 = arith.constant 0 : index
    %c0_3 = arith.constant 0 : index
    %2 = vector.load %arg3[%c0_1, %c0_2, %c0_3] : memref<1x256x128xbf16, #tpu.memory_space<vmem>>, vector<1x256x128xbf16>
    %3 = vector.shape_cast %2 : vector<1x256x128xbf16> to vector<256x128xbf16>
    %cst = arith.constant dense<0.000000e+00> : vector<16x128xf32>
    %4 = tpu.matmul %1, %3, %cst {dimension_numbers = #tpu.dot_dimension_numbers<[1], [0], [0], [1], [0, 0, 1, 1], [], []>} : vector<16x256xbf16>, vector<256x128xbf16>, vector<16x128xf32> -> vector<16x128xf32>
    %cst_4 = arith.constant 0.000000e+00 : f32
    %5 = vector.broadcast %cst_4 : f32 to vector<16x128xf32>
    %6 = arith.maximumf %4, %5 : vector<16x128xf32>
    %7 = arith.truncf %6 : vector<16x128xf32> to vector<16x128xbf16>
    %c0_5 = arith.constant 0 : index
    %c0_6 = arith.constant 0 : index
    %c0_7 = arith.constant 0 : index
    %8 = vector.load %arg4[%c0_5, %c0_6, %c0_7] : memref<1x128x256xbf16, #tpu.memory_space<vmem>>, vector<1x128x256xbf16>
    %9 = vector.shape_cast %8 : vector<1x128x256xbf16> to vector<128x256xbf16>
    %cst_8 = arith.constant dense<0.000000e+00> : vector<16x256xf32>
    %10 = tpu.matmul %7, %9, %cst_8 {dimension_numbers = #tpu.dot_dimension_numbers<[1], [0], [0], [1], [0, 0, 1, 1], [], []>} : vector<16x128xbf16>, vector<128x256xbf16>, vector<16x256xf32> -> vector<16x256xf32>
    %11 = arith.addf %0, %10 : vector<16x256xf32>
    %c0_9 = arith.constant 0 : index
    %c0_10 = arith.constant 0 : index
    %12 = vector.load %arg5[%c0_9, %c0_10] : memref<16x256xf32, #tpu.memory_space<vmem>>, vector<16x256xf32>
    tpu.vector_store %arg5[%c0_9, %c0_10], %11 {strides = array<i32>} : memref<16x256xf32, #tpu.memory_space<vmem>>, vector<16x256xf32>,
    return
  }
  func.func @transform_0(%arg0: i32, %arg1: memref<2xi32, #tpu.memory_space<smem>>) -> (i32, i32) {
    %c0_i32 = arith.constant 0 : i32
    %c0_i32_0 = arith.constant 0 : i32
    return %arg0, %c0_i32 : i32, i32
  }
  func.func @transform_1(%arg0: i32, %arg1: memref<2xi32, #tpu.memory_space<smem>>) -> (i32, i32, i32) {
    %0 = arith.index_cast %arg0 : i32 to index
    %1 = memref.load %arg1[%0] : memref<2xi32, #tpu.memory_space<smem>>
    %c0_i32 = arith.constant 0 : i32
    %c0_i32_0 = arith.constant 0 : i32
    %c0_i32_1 = arith.constant 0 : i32
    return %1, %c0_i32, %c0_i32_0 : i32, i32, i32
  }
  func.func @transform_2(%arg0: i32, %arg1: memref<2xi32, #tpu.memory_space<smem>>) -> (i32, i32, i32) {
    %0 = arith.index_cast %arg0 : i32 to index
    %1 = memref.load %arg1[%0] : memref<2xi32, #tpu.memory_space<smem>>
    %c0_i32 = arith.constant 0 : i32
    %c0_i32_0 = arith.constant 0 : i32
    %c0_i32_1 = arith.constant 0 : i32
    return %1, %c0_i32, %c0_i32_0 : i32, i32, i32
  }
  func.func @transform_3(%arg0: i32, %arg1: memref<2xi32, #tpu.memory_space<smem>>) -> (i32, i32) {
    %c0_i32 = arith.constant 0 : i32
    %c0_i32_0 = arith.constant 0 : i32
    return %arg0, %c0_i32 : i32, i32
  }
}

</mosaic_0001>

<bundles_post_ra>
// kernel: fcbd_forward.1
= control target key start
LH: loop header
LB: loop body
LE: loop exit
PB: predicated region body
PF: predicated region fallthrough
CT: control target
= control target key end

     0   :  { %s1118_s0 = inlined_call_operand.vmem [shape: s32[2], index: 0, kind: input, shape index: {}]   ;;  %s1119_s1 = inlined_call_operand.vmem [shape: f32[32,256], index: 1, kind: input, shape index: {}]   ;;  %s1120_s2 = inlined_call_operand.vmem [shape: bf16[2,256,128], index: 2, kind: input, shape index: {}]   ;;  %s1121_s3 = inlined_call_operand.hbm [shape: bf16[2,128,256], index: 3, kind: input, shape index: {}]   ;;  %s1122_s4 = inlined_call_operand.vmem [shape: f32[32,256], index: 4, kind: output, shape index: {}]  }
   0x1   :  { %s9_s17 = sshll.u32 %s1118_s0, 4  ;;  %s10_s17 = int_to_ptr.vmem [resolvable:$true] %s9_s17 }
   0x2   :  { %s840_s18 = scalar_lea.vmem %s10_s17, 16  ;;  %p845_p1 = scmp.lt.s32.totalorder %s10_s17, %s10_s17 }
   0x3   :  { %p841_p0 = scmp.ne.s32.totalorder %s10_s17, %s840_s18  ;;  %p846_p2 = scmp.lt.s32.totalorder %s840_s18, %s840_s18 }
   0x5   :  { %p847_p3 = por %p846_p2, %p845_p1 }
   0x7   :  { %p848_p4 = pnand %p847_p3, %p841_p0 }
   0x9   :  { %851 = shalt.err (!%p848_p4)  }
   0xa   :  { %s920_s19 = smov [#allocation3]  }
   0xb   :  { %12 = dma.vmem_to_smem %s10_s17, 16, %s920_s19, [#allocation2] }
   0xc   :  { %898 = dma.done.wait [#allocation2], 16 }
   0xd   :  { %899 = vsyncadd [#allocation2], 4294967280 }
   0xe   :  { %14 = sfence }
   0xf   :  { %15 = vsyncpa [#allocation5], 0 }
  0x10   :  { %17 = vsyncpa [#allocation5 + $0x1], 0  ;;  %s953_s20 = smov 0   ;;  %s955_s21 = smov 0  }
  0x11   :  { %s957_s0 = smov 0   ;;  %s959_s22 = smov 0  }
  0x12 LB: > { %s969_s23 = sadd.s32 4294967295, %s918_s22   ;;  %s971_s24 = sadd.s32 1, %s918_s22   ;;  %s918_s22 = sphi %s959_s22, %s1131_s22   ;;  %s914_s0 = sphi %s957_s0, %s1130_s0   ;;  %s910_s21 = sphi %s955_s21, %s1129_s21   ;;  %s906_s20 = sphi %s953_s20, %s1128_s20  }
  0x13   : > { %s81_s25 = sld [smem:[#allocation3 + %s918_s22]]  ;;  %p93_p5 = scmp.ne.s32.totalorder %s914_s0, %s910_s21 }
  0x14   : > { %s82_s26 = sld [smem:[#allocation3 + %s971_s24]]  ;;  %p94_p6 = scmp.eq.s32.totalorder %s918_s22, 0 }
  0x15   : > { %p99_p7 = scmp.ne.s32.totalorder %s910_s21, %s906_s20  ;;  %p100_p8 = scmp.eq.s32.totalorder %s969_s23, 0 }
  0x16   : > { %s86_s27 = sadd.s32 1, %s914_s0  ;;  %p95_p9 = por %p94_p6, %p93_p5 }
  0x17   : > { %p979_p10 = por %p100_p8, %p99_p7  ;;  %s169_s29 = sand.u32 1, %s914_s0  }
  0x18   : > { %p763_p11 = scmp.lt.s32.totalorder %s918_s22, 2  ;;  %s680_s5 = sshll.u32 %s169_s29, 7 }
  0x19   : > { %s1124_s28 = scalar_select %p979_p10, 1, 0 }
  0x1a   : > { %s83_s30 = ssub.s32 %s81_s25, %s82_s26  ;;  %p984_p13 = pnand %p763_p11, %p95_p9 }
  0x1b   : > { %p84_p12 = scmp.eq.s32.totalorder %s83_s30, 0  ;;  %s173_s11 = scalar_lea.vmem [#allocation4], %s680_s5 }
  0x1c   : > { %s753_s8 = scalar_select %p95_p9, [#allocation3], [#allocation6] }
  0x1d   : > { %s989_s7 = scalar_select %p84_p12, %s914_s0, %s86_s27  }
  0x1e   : > { %s754_s9 = scalar_select %p95_p9, %s918_s22, 0 }
  0x1f   : > { %s1133_s8 = smov (!%p763_p11, %s753_s8), [#allocation7]  ;;  %s181_s12 = sshll.u32 %s173_s11, 4  ;;  %s991_s12 = int_to_ptr.vmem [resolvable:$true] %s181_s12 }
  0x20   : > { %s1135_s9 = smov (!%p763_p11, %s754_s9), 0  ;;  %p683_p0 = scmp.ge.s32.totalorder %s918_s22, 1 }
  0x21   : > { %s174_s10 = sld [smem:[%s1133_s8 + %s1135_s9]]  ;;  %p189_p1 = scmp.lt.s32.totalorder %s918_s22, 3 }
  0x22   : > { %s1002_s18 = scalar_lea.sflag [#allocation5], %s169_s29  ;;  %p854_p4 = pneg %p984_p13 }
  0x23   : > { %p993_p2 = pnand %p683_p0, %p189_p1  ;;  %s857_s25 = scalar_lea.hbm %s1121_s3, 4096 }
  0x27   : > { %s727_s14 = sshll.u32 %s174_s10, 11 }
  0x28   : > { %s1000_s17 = scalar_lea.hbm %s1121_s3, %s727_s14 }
  0x29   : > { %s852_s19 = scalar_lea.hbm %s1000_s17, 2048  ;;  %p858_p7 = scmp.lt.u32.totalorder %s1000_s17, %s1121_s3 }
  0x2a   : > { %p853_p3 = scmp.ne.s32.totalorder %s1000_s17, %s852_s19  ;;  %p859_p8 = scmp.lt.u32.totalorder %s857_s25, %s852_s19 }
  0x2b   : > { %p861_p11 = scmp.lt.u32.totalorder %s852_s19, %s1000_s17 }
  0x2c   : > { %p855_p5 = pnand %p854_p4, %p853_p3  ;;  %p860_p9 = por %p859_p8, %p858_p7 }
  0x2e   : > { %p856_p6 = pneg %p855_p5  ;;  %p862_p12 = por %p861_p11, %p860_p9 }
  0x30   : > { %p863_p0 = pnand %p862_p12, %p856_p6 }
  0x32   : > { %866 = shalt.err (!%p863_p0)
}
  0x33   : > { %s867_s29 = scalar_lea.vmem %s991_s12, 2048  ;;  %s921_s30 = smov [#allocation4]  }
  0x34   : > { %p868_p1 = scmp.ne.s32.totalorder %s991_s12, %s867_s29  ;;  %s872_s5 = sshll.u32 %s921_s30, 4  ;;  %s873_s5 = int_to_ptr.vmem [resolvable:$false] %s872_s5 }
  0x35   : > { %s874_s8 = scalar_lea.vmem %s873_s5, 4096  ;;  %p875_p10 = scmp.lt.s32.totalorder %s991_s12, %s873_s5 }
  0x36   : > { %p870_p3 = pnand %p868_p1, %p854_p4  ;;  %p876_p7 = scmp.lt.s32.totalorder %s874_s8, %s867_s29 }
  0x38   : > { %p871_p5 = pneg %p870_p3  ;;  %p877_p8 = por %p876_p7, %p875_p10 }
  0x3a   : > { %p878_p9 = pnand %p877_p8, %p871_p5 }
  0x3c   : > { %881 = shalt.err (!%p878_p9)
}
  0x3d   : > { %s922_s9 = smov 128   ;;  %s923_s10 = smov 8  }
  0x3e   : > { %762 = dma.hbm_to_vmem [thread:$0]  (!%p984_p13), %s1000_s17, 2048, %s991_s12, %s1002_s18, %s922_s9, %s922_s9, %s923_s10  }
  0x3f   : > { %193 = sbr.rel (%p993_p2) target bundleno = 554 (0x22a), region = 32  ;;  %s195_s11 = sand.u32 (!%p993_p2), 1, %s910_s21  }
  0x40   : > { %s684_s14 = sshll.u32 (!%p993_p2), %s195_s11, 7  ;;  %s196_s15 = scalar_lea.sflag (!%p993_p2), [#allocation5], %s195_s11 }
  0x41   : > { %s1033_s16 = scalar_lea.vmem (!%p993_p2), [#allocation4], %s684_s14  ;;  %p1127_p10 = scmp.ne.s32.totalorder (!%p993_p2), %s1124_s28, 0 }
  0x46   : > { %901 = dma.done.wait (%p1127_p10), %s196_s15, 2048  }
  0x47   : > { %903 = vsyncadd (%p1127_p10), %s196_s15, 4294965248  ;;  %s685_s6 = sshll.u32 %s969_s23, 1  ;;  %s242_s12 = sld [smem:[#allocation3 + %s969_s23]]  ;;  %v816_v3 = vld [vmem:[%s1033_s16 + $0x4] ss:$8 sps:$4 sm:$0xff]   ;;  %v924_v38 = vmov 0  }
  0x48   : > { %p236_p13 = scmp.lt.s32.totalorder %s685_s6, 3  ;;  %v818_v4 = vld [vmem:[%s1033_s16] ss:$8 sps:$4 sm:$0xff]   ;;  %v819_v5 = vld [vmem:[%s1033_s16 + $0x14] ss:$8 sps:$4 sm:$0xff]   ;;  %532 = vmatprep.subr.bf16.mxu1 %v816_v3  ;;  %564 = vmatprep.mubr.bf16.mxu1 %v924_v38 }
  0x49   : > { %v821_v6 = vld [vmem:[%s1033_s16 + $0x10] ss:$8 sps:$4 sm:$0xff]   ;;  %533 = vmatpush1.bf16.msra.mxu1 %v818_v4  ;;  %v822_v7 = vld [vmem:[%s1033_s16 + $0x24] ss:$8 sps:$4 sm:$0xff]   ;;  %v824_v10 = vld [vmem:[%s1033_s16 + $0x20] ss:$8 sps:$4 sm:$0xff]  }
  0x4a   : > { %s1137_s6 = smov (!%p236_p13, %s685_s6), 3  ;;  %534 = vmatprep.subr.bf16.mxu1 %v819_v5  ;;  %v825_v20 = vld [vmem:[%s1033_s16 + $0x34] ss:$8 sps:$4 sm:$0xff]   ;;  %v827_v21 = vld [vmem:[%s1033_s16 + $0x30] ss:$8 sps:$4 sm:$0xff]  }
  0x4b   : > { %s728_s13 = sshll.u32 %s1137_s6, 4  ;;  %v828_v23 = vld [vmem:[%s1033_s16 + $0x44] ss:$8 sps:$4 sm:$0xff]   ;;  %v830_v25 = vld [vmem:[%s1033_s16 + $0x40] ss:$8 sps:$4 sm:$0xff]  }
  0x4c   : > { %s1049_s28 = scalar_lea.vmem %s1119_s1, %s728_s13  ;;  %v831_v26 = vld [vmem:[%s1033_s16 + $0x54] ss:$8 sps:$4 sm:$0xff]   ;;  %v833_v28 = vld [vmem:[%s1033_s16 + $0x50] ss:$8 sps:$4 sm:$0xff]   ;;  %v834_v34 = vld [vmem:[%s1033_s16 + $0x64] ss:$8 sps:$4 sm:$0xff]   ;;  %s255_s27 = scalar_lea.vmem %s1122_s4, %s728_s13 }
  0x4d   : > { %p243_p2 = scmp.lt.s32.totalorder %s242_s12, 1  ;;  %v1052_v0 = vld [vmem:[%s1049_s28 + $0x8] sm:$0xff]  ;;  %v1055_v1 = vld [vmem:[%s1049_s28 + $0x18] sm:$0xff]  ;;  %535 = vmatpush1.bf16.msra.mxu1 %v821_v6  ;;  %v258_v31 = vld [vmem:[%s1049_s28] sm:$0xff] }
  0x4e   : > { %v263_v2 = vpack.c.bf16 %v1055_v1, %v1052_v0  ;;  %536 = vmatprep.subr.bf16.mxu1 %v822_v7  ;;  %v260_v32 = vld [vmem:[%s1049_s28 + $0x10] sm:$0xff]  ;;  %v836_v35 = vld [vmem:[%s1033_s16 + $0x60] ss:$8 sps:$4 sm:$0xff]  }
  0x4f   : > { %s1139_s12 = smov (!%p243_p2, %s242_s12), 1  ;;  %v262_v33 = vpack.c.bf16 %v260_v32, %v258_v31  ;;  %v837_v36 = vld [vmem:[%s1033_s16 + $0x74] ss:$8 sps:$4 sm:$0xff]   ;;  %v839_v37 = vld [vmem:[%s1033_s16 + $0x70] ss:$8 sps:$4 sm:$0xff]  }
  0x50   : > { %424 = vmatprep.mubr.bf16.mxu0 %v263_v2  ;;  %s729_s23 = sshll.u32 %s1139_s12, 7 }
  0x51   : > { %s1066_s22 = scalar_lea.vmem %s1120_s2, %s729_s23  ;;  %537 = vmatpush1.bf16.msra.mxu1 %v824_v10 }
  0x52   : > { %v800_v8 = vld [vmem:[%s1066_s22 + $0x40] sm:$0xff]   ;;  %v802_v11 = vld [vmem:[%s1066_s22 + $0x48] sm:$0xff]   ;;  %v804_v13 = vld [vmem:[%s1066_s22 + $0x50] sm:$0xff]   ;;  %538 = vmatprep.subr.bf16.mxu1 %v825_v20 }
  0x53   : > { %v801_v9 = vld [vmem:[%s1066_s22] sm:$0xff]   ;;  %731 = vmatprep.subr.bf16.mxu0 %v800_v8  ;;  %v803_v12 = vld [vmem:[%s1066_s22 + $0x8] sm:$0xff]   ;;  %v805_v14 = vld [vmem:[%s1066_s22 + $0x10] sm:$0xff]  }
  0x54   : > { %732 = vmatpush3.bf16.msra.mxu0 %v801_v9  ;;  %v806_v15 = vld [vmem:[%s1066_s22 + $0x58] sm:$0xff]   ;;  %v808_v17 = vld [vmem:[%s1066_s22 + $0x60] sm:$0xff]   ;;  %v810_v19 = vld [vmem:[%s1066_s22 + $0x68] sm:$0xff]  }
  0x55   : > { %733 = vmatprep.subr.bf16.mxu0 %v802_v11  ;;  %v807_v16 = vld [vmem:[%s1066_s22 + $0x18] sm:$0xff]   ;;  %v809_v18 = vld [vmem:[%s1066_s22 + $0x20] sm:$0xff]   ;;  %v811_v22 = vld [vmem:[%s1066_s22 + $0x28] sm:$0xff]   ;;  %539 = vmatpush1.bf16.msra.mxu1 %v827_v21 }
  0x56   : > { %v812_v24 = vld [vmem:[%s1066_s22 + $0x70] sm:$0xff]   ;;  %540 = vmatprep.subr.bf16.mxu1 %v828_v23  ;;  %v814_v29 = vld [vmem:[%s1066_s22 + $0x78] sm:$0xff]  }
  0x57   : > { %v813_v27 = vld [vmem:[%s1066_s22 + $0x30] sm:$0xff]   ;;  %v815_v30 = vld [vmem:[%s1066_s22 + $0x38] sm:$0xff]  }
  0x58   : > { %734 = vmatpush3.bf16.msra.mxu0 %v803_v12 }
  0x59   : > { %735 = vmatprep.subr.bf16.mxu0 %v804_v13  ;;  %541 = vmatpush1.bf16.msra.mxu1 %v830_v25 }
  0x5a   : > { %542 = vmatprep.subr.bf16.mxu1 %v831_v26 }
  0x5c   : > { %736 = vmatpush3.bf16.msra.mxu0 %v805_v14 }
  0x5d   : > { %737 = vmatprep.subr.bf16.mxu0 %v806_v15  ;;  %543 = vmatpush1.bf16.msra.mxu1 %v833_v28 }
  0x5e   : > { %544 = vmatprep.subr.bf16.mxu1 %v834_v34 }
  0x60   : > { %738 = vmatpush3.bf16.msra.mxu0 %v807_v16 }
  0x61   : > { %739 = vmatprep.subr.bf16.mxu0 %v808_v17  ;;  %545 = vmatpush1.bf16.msra.mxu1 %v836_v35 }
  0x62   : > { %546 = vmatprep.subr.bf16.mxu1 %v837_v36 }
  0x64   : > { %740 = vmatpush3.bf16.msra.mxu0 %v809_v18 }
  0x65   : > { %741 = vmatprep.subr.bf16.mxu0 %v810_v19  ;;  %547 = vmatpush1.bf16.msra.mxu1 %v839_v37 }
  0x68   : > { %742 = vmatpush3.bf16.msra.mxu0 %v811_v22 }
  0x69   : > { %743 = vmatprep.subr.bf16.mxu0 %v812_v24 }
  0x6c   : > { %744 = vmatpush3.bf16.msra.mxu0 %v813_v27 }
  0x6d   : > { %745 = vmatprep.subr.bf16.mxu0 %v814_v29 }
  0x70   : > { %746 = vmatpush3.bf16.msra.mxu0 %v815_v30 }
  0x73   : > { %425 = vmatmul.mubr.bf16.vlgmr.msra.gmra.mrb[0].mxu0 %v262_v33 }
 0x146   : > { %v747_v39 = vpop.f32.mrb[0].mxu0 }
 0x147   : > { %v748_v40 = vpop.f32.mrb[1].mxu0 }
 0x148   : > { %v749_v41 = vadd.f32 %v748_v40, %v747_v39  ;;  %v750_v42 = vpop.f32.mrb[2].mxu0 }
 0x149   : > { %v751_v43 = vpop.f32.mrb[3].mxu0 }
 0x14a   : > { %v752_v44 = vadd.f32 %v751_v43, %v750_v42  ;;  %v433_v45 = vmax.f32 %v749_v41, 0.0 }
 0x14c   : > { %v434_v46 = vmax.f32 %v752_v44, 0.0 }
 0x14e   : > { %v435_v47 = vpack.c.bf16 %v434_v46, %v433_v45 }
 0x150   : > { %565 = vmatmul.mubr.bf16.vlgmr.msra.gmra.mrb[0].mxu1 %v435_v47 }
 0x223   : > { %v566_v48 = vpop.f32.mrb[0].mxu1 }
 0x224   : > { %v575_v49 = vadd.f32 %v566_v48, %v258_v31  ;;  %v568_v50 = vpop.f32.mrb[1].mxu1 }
 0x225   : > { %v576_v51 = vadd.f32 %v568_v50, %v1052_v0  ;;  %v570_v52 = vpop.f32.mrb[2].mxu1 }
 0x226   : > { %579 = vst [vmem:[%s255_s27] sm:$0xff] %v575_v49  ;;  %v577_v53 = vadd.f32 %v570_v52, %v260_v32  ;;  %v572_v54 = vpop.f32.mrb[3].mxu1 }
 0x227   : > { %580 = vst [vmem:[%s255_s27 + $0x8] sm:$0xff] %v576_v51  ;;  %v578_v55 = vadd.f32 %v572_v54, %v1055_v1 }
 0x228   : > { %581 = vst [vmem:[%s255_s27 + $0x10] sm:$0xff] %v577_v53 }
 0x229   : > { %582 = vst [vmem:[%s255_s27 + $0x18] sm:$0xff] %v578_v55 }
 0x22a PF: > { %p20_p4 = scmp.ge.s32.totalorder %s971_s24, 4   ;;  %s1128_s20 = smov %s910_s21 }
 0x22b   : > { %s1129_s21 = smov %s914_s0  ;;  %s1130_s0 = smov %s989_s7 }
 0x22c   : > { %s1131_s22 = smov %s971_s24  ;;  %22 = sbr.rel (!%p20_p4) target bundleno = 18 (0x12), region = 78 }
 0x233   :  { %607 = vsyncpa [#allocation5], 1 }
 0x234   :  { %609 = vsyncpa [#allocation5 + $0x1], 1 }

</bundles_post_ra>
